<compile_context>
chip_gen: v6e
topology: v6e:2x2x1
jax: 0.10.0
libtpu: 0.0.40
codegen_flags: <defaults>
</compile_context>

<pallas_src>
import functools
import math

import jax
import jax.numpy as jnp
from jax.experimental import pallas as pl
from jax.experimental.pallas import tpu as pltpu


def _round_up(n, m):
    return ((n + m - 1) // m) * m


def _round_down(n, m):
    return (n // m) * m


def nice_coupling_kernel(x_ref,
                         wf1_ref, bf1_ref, wf2_ref, bf2_ref,
                         wg1_ref, bg1_ref, wg2_ref, bg2_ref,
                         out_ref, *, split1):
    """One row-tile of the NICE coupling forward (rev=False).

    y1 = x1 + F(x2);  y2 = x2 + G(y1)
    F, G are Linear -> ReLU -> Linear subnets (MXU matmuls, f32 accumulation).
    Matmul-operand dtype follows the weight dtype (f32 or bf16); bias adds and
    residual adds stay f32 regardless of the activation / weight dtype.
    """
    op_dtype = wf1_ref.dtype

    # Static ref slices load each half directly (no concat / no extra temp).
    # For realistic H (multiple of 256) split1 is a multiple of 128, so these
    # loads/stores are lane-aligned; small demo H just uses masked vector ops.
    x1 = x_ref[:, :split1].astype(jnp.float32)
    x2 = x_ref[:, split1:].astype(jnp.float32)

    def subnet(v, w1_ref, b1_ref, w2_ref, b2_ref):
        h = jnp.dot(v.astype(op_dtype), w1_ref[...],
                    preferred_element_type=jnp.float32) + b1_ref[...]
        h = jnp.maximum(h, 0.0)
        return jnp.dot(h.astype(op_dtype), w2_ref[...],
                       preferred_element_type=jnp.float32) + b2_ref[...]

    y1 = x1 + subnet(x2, wf1_ref, bf1_ref, wf2_ref, bf2_ref)   # f32
    y2 = x2 + subnet(y1, wg1_ref, bg1_ref, wg2_ref, bg2_ref)   # f32

    # Direct half-writes into the output block (no jnp.concatenate).
    out_ref[:, :split1] = y1.astype(out_ref.dtype)
    out_ref[:, split1:] = y2.astype(out_ref.dtype)


def nice_coupling_forward(x, params, *, tile_rows=None, compute_dtype="auto",
                          target_block_bytes=4 << 20, vmem_limit_bytes=None,
                          single_buffer_params=False, row_buffer_count=None):
    """NICE coupling block forward (rev=False, no conditional inputs).

    x: [B, S, H], f32 or bf16.  Keeping activations bf16 in HBM roughly halves
       the activation traffic of this HBM-bound kernel (in-kernel bias/residual
       adds stay f32; only the HBM dtype changes).
    params: (wf1, bf1, wf2, bf2, wg1, bg1, wg2, bg2); weights stored (in, out),
       biases (1, out).
    tile_rows: rows per grid step.  Default (None) auto-sizes the block to
       ~target_block_bytes of activations (rounded to a multiple of 8 rows);
       ~2-4 MiB blocks reach ~85-90% of the HBM roofline.  The last grid block
       may be ragged; Pallas masks it, so no wrapper padding is needed.
    compute_dtype: "auto" -> bf16 matmul operands once H >= 2048 (MXU-bound
       regime on v5e/v6e), else keep the param dtype; None -> keep param dtype;
       or an explicit dtype (e.g. jnp.bfloat16).  Accumulation is always f32.
       For repeated calls, pre-cast the weights once outside instead.
    single_buffer_params: single-buffer the grid-invariant weight blocks
       (saves ~2*H^2 bytes of VMEM at large H; useful on v7x's 64 MiB VMEM).
    row_buffer_count: optional deeper pipelining (e.g. 3) for the row blocks if
       a profile still shows exposed DMA after enlarging tiles (v7x).
    """
    B, S, H = x.shape
    N = B * S
    split1 = H // 2
    split2 = H - split1

    if compute_dtype == "auto":
        compute_dtype = jnp.bfloat16 if H >= 2048 else None

    wf1, bf1, wf2, bf2, wg1, bg1, wg2, bg2 = params
    if compute_dtype is not None:
        wf1, wf2, wg1, wg2 = (w.astype(compute_dtype)
                              for w in (wf1, wf2, wg1, wg2))
    kparams = (wf1, bf1, wf2, bf2, wg1, bg1, wg2, bg2)

    itemsize = jnp.dtype(x.dtype).itemsize
    param_bytes = sum(int(p.size) * jnp.dtype(p.dtype).itemsize for p in kparams)
    param_buf = 1 if single_buffer_params else 2

    # ---- row-tile sizing (multiple of 8 rows; clamp to N) -----------------
    if tile_rows is None:
        tile_rows = max(8, _round_down(target_block_bytes // (H * itemsize), 8))
    else:
        tile_rows = max(8, _round_up(int(tile_rows), 8))

    # Generation-aware VMEM budget (v7x physical VMEM is only 64 MiB).
    try:
        phys_vmem = int(getattr(pltpu.get_tpu_info(), "vmem_capacity_bytes",
                                64 << 20))
    except Exception:
        phys_vmem = 64 << 20          # conservative fallback
    vmem_cap = int(phys_vmem * 0.8)

    def vmem_need(tr):
        tile_bytes = tr * H * itemsize
        interm_bytes = 3 * tr * H * 4          # f32 x1/x2, hidden, y1/y2 temps
        nbuf = row_buffer_count if row_buffer_count else 2
        return (2 * nbuf * tile_bytes          # pipelined in + out row blocks
                + param_buf * param_bytes
                + interm_bytes
                + (4 << 20))                   # compiler scratch slack

    # Shrink the tile (keeping a multiple of 8) until it fits the budget.
    while tile_rows > 8 and vmem_need(tile_rows) > vmem_cap:
        tile_rows = max(8, _round_down(tile_rows // 2, 8))

    if tile_rows >= N:
        tile_rows = N                          # one full block (any N is legal)
    grid = pl.cdiv(N, tile_rows)

    if vmem_limit_bytes is None:
        vmem_limit_bytes = int(min(max(vmem_need(tile_rows), 32 << 20), vmem_cap))

    x2d = x.reshape(N, H)                      # free view; no pad, no copy

    row_kwargs = {}
    if row_buffer_count:
        row_kwargs["pipeline_mode"] = pl.Buffered(row_buffer_count)
    row_spec = pl.BlockSpec((tile_rows, H), lambda i: (i, 0), **row_kwargs)

    # Weights/biases: whole array resident in VMEM, constant block index.
    param_kwargs = {}
    if single_buffer_params:
        param_kwargs["pipeline_mode"] = pl.Buffered(1)
    param_specs = [pl.BlockSpec(p.shape, lambda i: (0, 0), **param_kwargs)
                   for p in kparams]

    # Advisory cost estimate so XLA schedules neighbors sensibly.
    hF = wf1.shape[1]
    hG = wg1.shape[1]
    flops = 2 * N * (split2 * hF + hF * split1 + split1 * hG + hG * split2)
    bytes_accessed = 2 * N * H * itemsize + param_bytes
    cost = pl.CostEstimate(flops=flops, transcendentals=0,
                           bytes_accessed=bytes_accessed)

    out2d = pl.pallas_call(
        functools.partial(nice_coupling_kernel, split1=split1),
        out_shape=jax.ShapeDtypeStruct((N, H), x.dtype),
        grid=(grid,),
        in_specs=[row_spec] + param_specs,
        out_specs=row_spec,
        compiler_params=pltpu.CompilerParams(
            # Rows are independent: lets the grid shard across v7x's two TCs.
            # TODO(synk): if a v7x profile shows one core idle, switch this
            # axis to pltpu.CORE_PARALLEL or an explicit core_map split.
            dimension_semantics=("parallel",),
            vmem_limit_bytes=vmem_limit_bytes),
        cost_estimate=cost,
    )(x2d, *kparams)

    return out2d.reshape(B, S, H)


def init_linear(key, fan_in, fan_out):
    """PyTorch nn.Linear default init: U(-1/sqrt(fan_in), 1/sqrt(fan_in)).
    Weight stored transposed as (fan_in, fan_out) so the kernel does x @ w + b."""
    kw, kb = jax.random.split(key)
    bound = 1.0 / math.sqrt(fan_in)
    w = jax.random.uniform(kw, (fan_in, fan_out), jnp.float32, -bound, bound)
    b = jax.random.uniform(kb, (1, fan_out), jnp.float32, -bound, bound)
    return w, b


def make_params(hidden, reduction_factor=2, seed=0):
    split1 = hidden // 2
    split2 = hidden - hidden // 2
    keys = jax.random.split(jax.random.PRNGKey(seed), 4)
    # F: Linear(split2, split2//r) -> relu -> Linear(split2//r, split1)
    wf1, bf1 = init_linear(keys[0], split2, split2 // reduction_factor)
    wf2, bf2 = init_linear(keys[1], split2 // reduction_factor, split1)
    # G: Linear(split1, split1//r) -> relu -> Linear(split1//r, split2)
    wg1, bg1 = init_linear(keys[2], split1, split1 // reduction_factor)
    wg2, bg2 = init_linear(keys[3], split1 // reduction_factor, split2)
    return (wf1, bf1, wf2, bf2, wg1, bg1, wg2, bg2)


def reference_forward(x, params):
    """Pure-JAX reference mirroring the PyTorch forward (rev=False, no cond),
    computed at HIGHEST matmul precision so tolerances can stay tight."""
    wf1, bf1, wf2, bf2, wg1, bg1, wg2, bg2 = params
    hp = jax.lax.Precision.HIGHEST
    H = x.shape[-1]
    split1 = H // 2
    x1, x2 = x[..., :split1], x[..., split1:]
    f = jnp.dot(jnp.maximum(jnp.dot(x2, wf1, precision=hp) + bf1[0], 0.0),
                wf2, precision=hp) + bf2[0]
    y1 = x1 + f
    g = jnp.dot(jnp.maximum(jnp.dot(y1, wg1, precision=hp) + bg1[0], 0.0),
                wg2, precision=hp) + bg2[0]
    y2 = x2 + g
    return jnp.concatenate([y1, y2], axis=-1)


# TODO(synk): rev=True inverse branch and conditional inputs (c=[...]) are not
# exercised here; they would be a second kernel with subtraction / concatenated
# condition channels, semantics otherwise identical.

if __name__ == "__main__":
    # Small demo shape consistent with the module: [batch, seq, hidden].
    B, S, H = 2, 8, 32
    key = jax.random.PRNGKey(0)
    x = jax.random.normal(key, (B, S, H), jnp.float32)
    params = make_params(H, reduction_factor=2, seed=0)

    out = jax.block_until_ready(nice_coupling_forward(x, params))
    ref = reference_forward(x, params)
    assert out.shape == (B, S, H)
    assert jnp.allclose(out, ref, atol=1e-4, rtol=1e-4), "f32 mismatch vs reference"

    # Larger shape: N=400 rows with tile_rows=192 -> ragged last grid block
    # handled by Pallas masking (no wrapper pad/slice), 128-aligned halves.
    B2, S2, H2 = 4, 100, 256
    x2 = jax.random.normal(jax.random.PRNGKey(1), (B2, S2, H2), jnp.float32)
    params2 = make_params(H2, reduction_factor=2, seed=1)
    ref2 = reference_forward(x2, params2)

    out2 = jax.block_until_ready(
        nice_coupling_forward(x2, params2, tile_rows=192))
    assert out2.shape == (B2, S2, H2)
    assert jnp.allclose(out2, ref2, atol=2e-4, rtol=2e-4), "ragged-grid mismatch"

    # Auto-sized tile path (single full block here) must agree as well.
    out2_auto = jax.block_until_ready(nice_coupling_forward(x2, params2))
    assert jnp.allclose(out2_auto, ref2, atol=2e-4, rtol=2e-4), "auto-tile mismatch"

    # bf16 activations in HBM + bf16 MXU operands (f32 accumulation/residuals):
    # ~2x lower activation traffic for this HBM-bound kernel on v5e/v6e/v7x.
    out_bf16 = jax.block_until_ready(
        nice_coupling_forward(x2.astype(jnp.bfloat16), params2,
                              compute_dtype=jnp.bfloat16))
    assert out_bf16.dtype == jnp.bfloat16
    assert jnp.allclose(out_bf16.astype(jnp.float32), ref2,
                        atol=1e-1, rtol=1e-1), "bf16 mismatch"

    print("KERNEL_OK")
</pallas_src>

<mosaic_0001>
module attributes {stable_mosaic.version = 11 : i64} {
  func.func @nice_coupling_kernel(%arg0: i32, %arg1: memref<16x32xf32, #tpu.memory_space<vmem>>, %arg2: memref<16x8xf32, #tpu.memory_space<vmem>>, %arg3: memref<1x8xf32, #tpu.memory_space<vmem>>, %arg4: memref<8x16xf32, #tpu.memory_space<vmem>>, %arg5: memref<1x16xf32, #tpu.memory_space<vmem>>, %arg6: memref<16x8xf32, #tpu.memory_space<vmem>>, %arg7: memref<1x8xf32, #tpu.memory_space<vmem>>, %arg8: memref<8x16xf32, #tpu.memory_space<vmem>>, %arg9: memref<1x16xf32, #tpu.memory_space<vmem>>, %arg10: memref<16x32xf32, #tpu.memory_space<vmem>>) attributes {dimension_semantics = [#tpu.dimension_semantics<parallel>], iteration_bounds = array<i64: 1>, scalar_prefetch = 0 : i64, scratch_operands = 0 : i64, tpu.core_type = #tpu.core_type<tc>, window_params = [{transform_indices = @transform_0, window_bounds = array<i64: 16, 32>}, {pipeline_mode = #tpu.pipeline_mode<synchronous>, transform_indices = @transform_1, window_bounds = array<i64: 16, 8>}, {pipeline_mode = #tpu.pipeline_mode<synchronous>, transform_indices = @transform_2, window_bounds = array<i64: 1, 8>}, {pipeline_mode = #tpu.pipeline_mode<synchronous>, transform_indices = @transform_3, window_bounds = array<i64: 8, 16>}, {pipeline_mode = #tpu.pipeline_mode<synchronous>, transform_indices = @transform_4, window_bounds = array<i64: 1, 16>}, {pipeline_mode = #tpu.pipeline_mode<synchronous>, transform_indices = @transform_5, window_bounds = array<i64: 16, 8>}, {pipeline_mode = #tpu.pipeline_mode<synchronous>, transform_indices = @transform_6, window_bounds = array<i64: 1, 8>}, {pipeline_mode = #tpu.pipeline_mode<synchronous>, transform_indices = @transform_7, window_bounds = array<i64: 8, 16>}, {pipeline_mode = #tpu.pipeline_mode<synchronous>, transform_indices = @transform_8, window_bounds = array<i64: 1, 16>}, {transform_indices = @transform_9, window_bounds = array<i64: 16, 32>}]} {
    %c0 = arith.constant 0 : index
    %c0_0 = arith.constant 0 : index
    %0 = vector.load %arg1[%c0, %c0_0] : memref<16x32xf32, #tpu.memory_space<vmem>>, vector<16x16xf32>
    %c0_1 = arith.constant 0 : index
    %c16 = arith.constant 16 : index
    %1 = vector.load %arg1[%c0_1, %c16] : memref<16x32xf32, #tpu.memory_space<vmem>>, vector<16x16xf32>
    %c0_2 = arith.constant 0 : index
    %c0_3 = arith.constant 0 : index
    %2 = vector.load %arg2[%c0_2, %c0_3] : memref<16x8xf32, #tpu.memory_space<vmem>>, vector<16x8xf32>
    %cst = arith.constant dense<0.000000e+00> : vector<16x8xf32>
    %3 = tpu.matmul %1, %2, %cst {dimension_numbers = #tpu.dot_dimension_numbers<[1], [0], [0], [1], [0, 0, 1, 1], [], []>} : vector<16x16xf32>, vector<16x8xf32>, vector<16x8xf32> -> vector<16x8xf32>
    %c0_4 = arith.constant 0 : index
    %c0_5 = arith.constant 0 : index
    %4 = vector.load %arg3[%c0_4, %c0_5] : memref<1x8xf32, #tpu.memory_space<vmem>>, vector<1x8xf32>
    %5 = vector.broadcast %4 : vector<1x8xf32> to vector<16x8xf32>
    %6 = arith.addf %3, %5 : vector<16x8xf32>
    %cst_6 = arith.constant 0.000000e+00 : f32
    %7 = vector.broadcast %cst_6 : f32 to vector<16x8xf32>
    %8 = arith.maximumf %6, %7 : vector<16x8xf32>
    %c0_7 = arith.constant 0 : index
    %c0_8 = arith.constant 0 : index
    %9 = vector.load %arg4[%c0_7, %c0_8] : memref<8x16xf32, #tpu.memory_space<vmem>>, vector<8x16xf32>
    %cst_9 = arith.constant dense<0.000000e+00> : vector<16x16xf32>
    %10 = tpu.matmul %8, %9, %cst_9 {dimension_numbers = #tpu.dot_dimension_numbers<[1], [0], [0], [1], [0, 0, 1, 1], [], []>} : vector<16x8xf32>, vector<8x16xf32>, vector<16x16xf32> -> vector<16x16xf32>
    %c0_10 = arith.constant 0 : index
    %c0_11 = arith.constant 0 : index
    %11 = vector.load %arg5[%c0_10, %c0_11] : memref<1x16xf32, #tpu.memory_space<vmem>>, vector<1x16xf32>
    %12 = vector.broadcast %11 : vector<1x16xf32> to vector<16x16xf32>
    %13 = arith.addf %10, %12 : vector<16x16xf32>
    %14 = arith.addf %0, %13 : vector<16x16xf32>
    %c0_12 = arith.constant 0 : index
    %c0_13 = arith.constant 0 : index
    %15 = vector.load %arg6[%c0_12, %c0_13] : memref<16x8xf32, #tpu.memory_space<vmem>>, vector<16x8xf32>
    %cst_14 = arith.constant dense<0.000000e+00> : vector<16x8xf32>
    %16 = tpu.matmul %14, %15, %cst_14 {dimension_numbers = #tpu.dot_dimension_numbers<[1], [0], [0], [1], [0, 0, 1, 1], [], []>} : vector<16x16xf32>, vector<16x8xf32>, vector<16x8xf32> -> vector<16x8xf32>
    %c0_15 = arith.constant 0 : index
    %c0_16 = arith.constant 0 : index
    %17 = vector.load %arg7[%c0_15, %c0_16] : memref<1x8xf32, #tpu.memory_space<vmem>>, vector<1x8xf32>
    %18 = vector.broadcast %17 : vector<1x8xf32> to vector<16x8xf32>
    %19 = arith.addf %16, %18 : vector<16x8xf32>
    %cst_17 = arith.constant 0.000000e+00 : f32
    %20 = vector.broadcast %cst_17 : f32 to vector<16x8xf32>
    %21 = arith.maximumf %19, %20 : vector<16x8xf32>
    %c0_18 = arith.constant 0 : index
    %c0_19 = arith.constant 0 : index
    %22 = vector.load %arg8[%c0_18, %c0_19] : memref<8x16xf32, #tpu.memory_space<vmem>>, vector<8x16xf32>
    %cst_20 = arith.constant dense<0.000000e+00> : vector<16x16xf32>
    %23 = tpu.matmul %21, %22, %cst_20 {dimension_numbers = #tpu.dot_dimension_numbers<[1], [0], [0], [1], [0, 0, 1, 1], [], []>} : vector<16x8xf32>, vector<8x16xf32>, vector<16x16xf32> -> vector<16x16xf32>
    %c0_21 = arith.constant 0 : index
    %c0_22 = arith.constant 0 : index
    %24 = vector.load %arg9[%c0_21, %c0_22] : memref<1x16xf32, #tpu.memory_space<vmem>>, vector<1x16xf32>
    %25 = vector.broadcast %24 : vector<1x16xf32> to vector<16x16xf32>
    %26 = arith.addf %23, %25 : vector<16x16xf32>
    %27 = arith.addf %1, %26 : vector<16x16xf32>
    %c0_23 = arith.constant 0 : index
    %c0_24 = arith.constant 0 : index
    %28 = vector.load %arg10[%c0_23, %c0_24] : memref<16x32xf32, #tpu.memory_space<vmem>>, vector<16x16xf32>
    tpu.vector_store %arg10[%c0_23, %c0_24], %14 {strides = array<i32>} : memref<16x32xf32, #tpu.memory_space<vmem>>, vector<16x16xf32>,
    %c0_25 = arith.constant 0 : index
    %c16_26 = arith.constant 16 : index
    %29 = vector.load %arg10[%c0_25, %c16_26] : memref<16x32xf32, #tpu.memory_space<vmem>>, vector<16x16xf32>
    tpu.vector_store %arg10[%c0_25, %c16_26], %27 {strides = array<i32>} : memref<16x32xf32, #tpu.memory_space<vmem>>, vector<16x16xf32>,
    return
  }
  func.func @transform_0(%arg0: i32) -> (i32, i32) {
    %c0_i32 = arith.constant 0 : i32
    %c0_i32_0 = arith.constant 0 : i32
    return %arg0, %c0_i32 : i32, i32
  }
  func.func @transform_1(%arg0: i32) -> (i32, i32) {
    %c0_i32 = arith.constant 0 : i32
    %c0_i32_0 = arith.constant 0 : i32
    %c0_i32_1 = arith.constant 0 : i32
    return %c0_i32, %c0_i32_0 : i32, i32
  }
  func.func @transform_2(%arg0: i32) -> (i32, i32) {
    %c0_i32 = arith.constant 0 : i32
    %c0_i32_0 = arith.constant 0 : i32
    %c0_i32_1 = arith.constant 0 : i32
    return %c0_i32, %c0_i32_0 : i32, i32
  }
  func.func @transform_3(%arg0: i32) -> (i32, i32) {
    %c0_i32 = arith.constant 0 : i32
    %c0_i32_0 = arith.constant 0 : i32
    %c0_i32_1 = arith.constant 0 : i32
    return %c0_i32, %c0_i32_0 : i32, i32
  }
  func.func @transform_4(%arg0: i32) -> (i32, i32) {
    %c0_i32 = arith.constant 0 : i32
    %c0_i32_0 = arith.constant 0 : i32
    %c0_i32_1 = arith.constant 0 : i32
    return %c0_i32, %c0_i32_0 : i32, i32
  }
  func.func @transform_5(%arg0: i32) -> (i32, i32) {
    %c0_i32 = arith.constant 0 : i32
    %c0_i32_0 = arith.constant 0 : i32
    %c0_i32_1 = arith.constant 0 : i32
    return %c0_i32, %c0_i32_0 : i32, i32
  }
  func.func @transform_6(%arg0: i32) -> (i32, i32) {
    %c0_i32 = arith.constant 0 : i32
    %c0_i32_0 = arith.constant 0 : i32
    %c0_i32_1 = arith.constant 0 : i32
    return %c0_i32, %c0_i32_0 : i32, i32
  }
  func.func @transform_7(%arg0: i32) -> (i32, i32) {
    %c0_i32 = arith.constant 0 : i32
    %c0_i32_0 = arith.constant 0 : i32
    %c0_i32_1 = arith.constant 0 : i32
    return %c0_i32, %c0_i32_0 : i32, i32
  }
  func.func @transform_8(%arg0: i32) -> (i32, i32) {
    %c0_i32 = arith.constant 0 : i32
    %c0_i32_0 = arith.constant 0 : i32
    %c0_i32_1 = arith.constant 0 : i32
    return %c0_i32, %c0_i32_0 : i32, i32
  }
  func.func @transform_9(%arg0: i32) -> (i32, i32) {
    %c0_i32 = arith.constant 0 : i32
    %c0_i32_0 = arith.constant 0 : i32
    return %arg0, %c0_i32 : i32, i32
  }
}

</mosaic_0001>

<bundles_post_ra>
// kernel: tpu_custom_call.1
= control target key start
LH: loop header
LB: loop body
LE: loop exit
PB: predicated region body
PF: predicated region fallthrough
CT: control target
= control target key end

     0   :  { %s513_s13 = smov 112   ;;  %s627_s0 = inlined_call_operand.vmem [shape: f32[16,32], index: 0, kind: input, shape index: {}]   ;;  %s628_s1 = inlined_call_operand.vmem [shape: f32[16,8], index: 1, kind: input, shape index: {}]   ;;  %s629_s2 = inlined_call_operand.vmem [shape: f32[1,8], index: 2, kind: input, shape index: {}]   ;;  %s630_s3 = inlined_call_operand.vmem [shape: f32[8,16], index: 3, kind: input, shape index: {}]   ;;  %s631_s4 = inlined_call_operand.vmem [shape: f32[1,16], index: 4, kind: input, shape index: {}]   ;;  %s632_s5 = inlined_call_operand.vmem [shape: f32[16,8], index: 5, kind: input, shape index: {}]   ;;  %s633_s6 = inlined_call_operand.vmem [shape: f32[1,8], index: 6, kind: input, shape index: {}]   ;;  %s634_s7 = inlined_call_operand.vmem [shape: f32[8,16], index: 7, kind: input, shape index: {}]   ;;  %s635_s8 = inlined_call_operand.vmem [shape: f32[1,16], index: 8, kind: input, shape index: {}]   ;;  %s636_s9 = inlined_call_operand.hbm [shape: f32[16,32], index: 9, kind: output, shape index: {}]  }
   0x1   :  { %v571_v0 = vld [vmem:[%s627_s0] sm:$0xff]  ;;  %v36_v1 = vld [vmem:[%s628_s1 + $0x8] sm:$0xff] }
   0x2   :  { %46 = vrot.lane.b32.xlu0 %v571_v0, %s513_s13  ;;  %462 = vmatprep.subr.mxu0 %v36_v1  ;;  %v35_v2 = vld [vmem:[%s628_s1] sm:$0xff] }
   0x3   :  { %14 = vsyncpa [#allocation3], 0  ;;  %v583_v3 = vld [vmem:[%s627_s0 + $0x8] sm:$0xff]  ;;  %463 = vmatpush3.msra.mxu0 %v36_v1  ;;  %vm50_vm0 = vcmask 130048   ;;  %v132_v6 = vld [vmem:[%s630_s3] sm:$0xff]  ;;  %vm140_vm1 = vcmask 64512  }
   0x4   :  { %464 = vmatprep.subr.mxu0 %v35_v2  ;;  %469 = vmatprep.subr.mxu1 %v132_v6  ;;  %v436_v7 = vld [vmem:[%s629_s2] ss:$0 sm:$0xff]  ;;  %v225_v14 = vld [vmem:[%s632_s5 + $0x8] sm:$0xff]  ;;  %vm417_vm2 = vcmask 261248  }
   0x5   :  { %465 = vmatpush3.msra.mxu0 %v35_v2  ;;  %470 = vmatpush3.msra.mxu1 %v132_v6  ;;  %v224_v15 = vld [vmem:[%s632_s5] sm:$0xff] }
   0x6   :  { %48 = vrot.lane.b32.xlu0 %v583_v3, %s513_s13  ;;  %474 = vmatprep.subr.mxu1 %v225_v14  ;;  %v439_v16 = vld [vmem:[%s631_s4] ss:$0 sm:$0xff] }
   0x7   :  { %v316_v23 = vld [vmem:[%s634_s7] sm:$0xff]  ;;  %s514_s7 = smov 16  }
   0x8   :  { %481 = vmatprep.subr.mxu0 %v316_v23  ;;  %v442_v24 = vld [vmem:[%s633_s6] ss:$0 sm:$0xff]  ;;  %s515_s6 = smov [#allocation2]  }
   0x9   :  { %v445_v32 = vld [vmem:[%s635_s8] ss:$0 sm:$0xff]  ;;  %s425_s28 = sshll.u32 %s515_s6, 4  ;;  %s426_s28 = int_to_ptr.vmem [resolvable:$true] %s425_s28 }
   0xa   :  { %s491_s29 = scalar_lea.vmem %s426_s28, 256  ;;  %p496_p1 = scmp.lt.s32.totalorder %s426_s28, %s426_s28 }
   0xb   :  { %p492_p0 = scmp.ne.s32.totalorder %s426_s28, %s491_s29  ;;  %p497_p2 = scmp.lt.s32.totalorder %s491_s29, %s491_s29 }
   0xd   :  { %p498_p3 = por %p497_p2, %p496_p1 }
   0xf   :  { %p499_p4 = pnand %p498_p3, %p492_p0 }
  0x74   :  { %v47_v4 = vpop.permute.xlu0 %46 }
  0x75   :  { %466 = vmatprep.mubr.msk.f32.mxu0 %vm50_vm0, %v47_v4 }
  0x78   :  { %v49_v5 = vpop.permute.xlu0 %48 }
  0x79   :  { %467 = vmatmul.mubr.msk.f32.vlgmr.msra.gmra.mxu0 %vm50_vm0, %v49_v5 }
  0x7a   :  { %482 = vmatpush3.msra.mxu0 %v316_v23 }
 0x139   :  { %v468_v8 = vpop.f32.mrf.mxu0 }
 0x13a   :  { %v127_v9 = vadd.f32 %v468_v8, %v436_v7 }
 0x13b   :  { %v121_v10 = vpop.f32.mrf.mxu0 }
 0x13c   :  { %v122_v11 = vadd.f32 %v436_v7, %v121_v10  ;;  %v131_v13 = vmax.f32 %v127_v9, 0.0 }
 0x13e   :  { %v130_v12 = vmax.f32 %v122_v11, 0.0 }
 0x140   :  { %471 = vmatprep.mubr.msk.f32.mxu1 %vm140_vm1, %v130_v12 }
 0x141   :  { %472 = vmatmul.mubr.msk.f32.vlgmr.msra.gmra.mxu1 %vm140_vm1, %v131_v13 }
 0x142   :  { %475 = vmatpush3.msra.mxu1 %v225_v14 }
 0x143   :  { %476 = vmatprep.subr.mxu1 %v224_v15 }
 0x144   :  { %477 = vmatpush3.msra.mxu1 %v224_v15 }
 0x201   :  { %v473_v17 = vpop.f32.mrf.mxu1 }
 0x202   :  { %v219_v18 = vadd.f32 %v473_v17, %v439_v16 }
 0x203   :  { %v213_v19 = vpop.f32.mrf.mxu1 }
 0x204   :  { %v223_v20 = vadd.f32 %v219_v18, %v583_v3  ;;  %v214_v21 = vadd.f32 %v439_v16, %v213_v19 }
 0x206   :  { %416 = vst.msk [vmem:[#allocation2 + $0x8] sm:$0xff] %vm50_vm0, %v223_v20  ;;  %v222_v22 = vadd.f32 %v214_v21, %v571_v0 }
 0x208   :  { %415 = vst.msk [vmem:[#allocation2] sm:$0xff] %vm50_vm0, %v222_v22  ;;  %478 = vmatprep.mubr.msk.f32.mxu1 %vm50_vm0, %v222_v22 }
 0x209   :  { %479 = vmatmul.mubr.msk.f32.vlgmr.msra.gmra.mxu1 %vm50_vm0, %v223_v20 }
 0x2c9   :  { %v480_v25 = vpop.f32.mrf.mxu1 }
 0x2ca   :  { %v311_v26 = vadd.f32 %v480_v25, %v442_v24 }
 0x2cb   :  { %v305_v27 = vpop.f32.mrf.mxu1 }
 0x2cc   :  { %v306_v28 = vadd.f32 %v442_v24, %v305_v27  ;;  %v315_v30 = vmax.f32 %v311_v26, 0.0 }
 0x2ce   :  { %v314_v29 = vmax.f32 %v306_v28, 0.0 }
 0x2d0   :  { %483 = vmatprep.mubr.msk.f32.mxu0 %vm140_vm1, %v314_v29 }
 0x2d1   :  { %484 = vmatmul.mubr.msk.f32.vlgmr.msra.gmra.mxu0 %vm140_vm1, %v315_v30 }
 0x391   :  { %v485_v31 = vpop.f32.mrf.mxu0 }
 0x392   :  { %v402_v35 = vadd.f32 %v485_v31, %v445_v32 }
 0x393   :  { %v396_v33 = vpop.f32.mrf.mxu0 }
 0x394   :  { %v397_v34 = vadd.f32 %v445_v32, %v396_v33 }
 0x396   :  { %407 = vrot.lane.b32.xlu1 %v397_v34, %s514_s7 }
 0x39a   :  { %409 = vrot.lane.b32.xlu1 %v402_v35, %s514_s7 }
 0x408   :  { %v408_v36 = vpop.permute.xlu1 %407 }
 0x409   :  { %v413_v37 = vadd.f32 %v408_v36, %v571_v0 }
 0x40b   :  { %418 = vst.msk [vmem:[#allocation2] sm:$0xff] %vm417_vm2, %v413_v37 }
 0x40c   :  { %v410_v38 = vpop.permute.xlu1 %409 }
 0x40d   :  { %v414_v39 = vadd.f32 %v410_v38, %v583_v3 }
 0x40f   :  { %419 = vst.msk [vmem:[#allocation2 + $0x8] sm:$0xff] %vm417_vm2, %v414_v39 }
 0x410   :  { %502 = shalt.err (!%p499_p4)
}
 0x411   :  { %s516_s8 = smov 128   ;;  %s517_s30 = smov 8  }
 0x412   :  { %431 = dma.vmem_to_hbm [thread:$0]  %s426_s28, 256, %s636_s9, [#allocation3], %s516_s8, %s516_s8, %s517_s30  }
 0x413   :  { %511 = dma.done.wait [#allocation3], 256  }
 0x414   :  { %512 = vsyncadd [#allocation3], 4294967040 }
 0x415   :  { %435 = vsyncpa [#allocation3], 1 }

</bundles_post_ra>
